<compile_context>
chip_gen: v7x
topology: tpu7x:2x2x1
jax: 0.10.0
libtpu: 0.0.40
codegen_flags: <defaults>
</compile_context>

<pallas_src>
import math
import functools

import numpy as np
import jax
import jax.numpy as jnp
from jax.experimental import pallas as pl
from jax.experimental.pallas import tpu as pltpu


# ---------------------------------------------------------------------------
# Kernel
# ---------------------------------------------------------------------------
def _squashed_gaussian_kernel(
    state_ref, w1_ref, b1_ref, w2_ref, b2_ref, wh_ref, bh_ref, lo_ref, hi_ref,
    out_ref,
):
    # f32 tile comes straight from HBM; cast to bf16 on the VPU (hidden under DMA/MXU)
    x = state_ref[...].astype(jnp.bfloat16)                              # [TB, I]

    # hidden layer 1: bf16 matmul on MXU, f32 accumulate, bias/relu on VPU in f32
    h1 = jnp.dot(x, w1_ref[...], preferred_element_type=jnp.float32) + b1_ref[...]
    h1 = jnp.maximum(h1, 0.0)

    # hidden layer 2
    h2 = jnp.dot(h1.astype(jnp.bfloat16), w2_ref[...],
                 preferred_element_type=jnp.float32) + b2_ref[...]
    h2 = jnp.maximum(h2, 0.0)

    # fused, lane-padded heads: one matmul produces [mean | log_std | 0-pad] = [TB, 128]
    heads = jnp.dot(h2.astype(jnp.bfloat16), wh_ref[...],
                    preferred_element_type=jnp.float32) + bh_ref[...]

    # per-column clamp: mean / padded columns have (-inf, +inf) bounds (no-op),
    # log_std columns have (-log(clip), +log(clip)).  Two VPU ops, no iota/select.
    heads = jnp.minimum(jnp.maximum(heads, lo_ref[...]), hi_ref[...])

    out_ref[...] = heads                                                 # full-width store


# ---------------------------------------------------------------------------
# Parameter packing
# ---------------------------------------------------------------------------
def pack_params(params, *, num_actions):
    """One-time packing: fuse the two head layers, zero-pad to a lane-dense (multiple
    of 128) output width, and cast matmul operands to bf16.

    Input `params` (all f32): w1 [I,H], b1 [1,H], w2 [H,H], b2 [1,H],
                              wm [H,A], bm [1,A], ws [H,A], bs [1,A].
    """
    A = int(num_actions)
    H = params["w1"].shape[1]
    A2 = 2 * A
    NP = max(128, ((A2 + 127) // 128) * 128)      # lane-dense head width

    wh = jnp.concatenate([params["wm"], params["ws"]], axis=1)           # [H, 2A]
    bh = jnp.concatenate([params["bm"], params["bs"]], axis=1)           # [1, 2A]
    wh = jnp.pad(wh, ((0, 0), (0, NP - A2)))                             # [H, NP]
    bh = jnp.pad(bh, ((0, 0), (0, NP - A2)))                             # [1, NP]

    return dict(
        w1=params["w1"].astype(jnp.bfloat16),
        b1=params["b1"].astype(jnp.float32),
        w2=params["w2"].astype(jnp.bfloat16),
        b2=params["b2"].astype(jnp.float32),
        wh=wh.astype(jnp.bfloat16),
        bh=bh.astype(jnp.float32),
        num_actions=A,
        head_width=NP,
        hidden_dim=H,
    )


def _round_up(x, m):
    return ((x + m - 1) // m) * m


def _num_tensorcores():
    """Best-effort TensorCore count per chip (2 on v7x, 1 on v5e/v6e)."""
    try:
        info = pltpu.get_tpu_info()
        for attr in ("tensorcores_per_chip", "num_cores", "core_count"):
            n = getattr(info, attr, None)
            if n:
                return max(int(n), 1)
    except Exception:
        pass
    try:
        n = getattr(jax.devices()[0], "num_cores", None)
        if n:
            return max(int(n), 1)
    except Exception:
        pass
    return 1


# ---------------------------------------------------------------------------
# Forward wrapper
# ---------------------------------------------------------------------------
def squashed_gaussian_forward(state, packed, *, clip_stddev=1000.0, block_batch=None):
    """SquashedGaussian.forward as a single Pallas kernel.

    state:  [B, num_inputs] float32
    packed: output of `pack_params`
    Returns (mean, log_std), each [B, num_actions] float32 (views into one lane-dense
    [B, 128] kernel output; pass the packed slab downstream if it can consume it).
    """
    B, I = state.shape
    H = int(packed["hidden_dim"])
    A = int(packed["num_actions"])
    NP = int(packed["head_width"])

    # --- batch tile selection -------------------------------------------------
    # One big tile by default (per-grid-step overhead dominates this tiny body);
    # on v7x split into 2 tiles so the "parallel" batch axis feeds both TensorCores.
    if block_batch is not None:
        TB = max(16, _round_up(int(block_batch), 16))
    else:
        ncores = _num_tensorcores()
        if ncores >= 2 and B >= 32:
            TB = _round_up(pl.cdiv(B, ncores), 16)
        else:
            TB = _round_up(min(B, 65536), 16)
    TB = min(TB, _round_up(B, 16))
    grid = (pl.cdiv(B, TB),)

    # --- per-column clamp bounds (constant rows, VMEM-resident) ---------------
    clip_enabled = clip_stddev > 0
    lo = np.full((1, NP), -np.inf, dtype=np.float32)
    hi = np.full((1, NP), np.inf, dtype=np.float32)
    if clip_enabled:
        t = float(math.log(clip_stddev))
        lo[0, A:2 * A] = -t
        hi[0, A:2 * A] = t
    lo = jnp.asarray(lo)
    hi = jnp.asarray(hi)

    flops = 2 * B * (I * H + H * H + H * NP)
    bytes_accessed = (
        B * I * 4                        # f32 state in
        + (I * H + H * H + H * NP) * 2   # bf16 weights
        + (H + H + NP) * 4               # f32 biases
        + 2 * NP * 4                     # clamp bounds
        + B * NP * 4                     # f32 lane-dense output
    )

    out = pl.pallas_call(
        _squashed_gaussian_kernel,
        out_shape=jax.ShapeDtypeStruct((B, NP), jnp.float32),
        grid=grid,
        in_specs=[
            pl.BlockSpec((TB, I), lambda i: (i, 0)),    # state: blocked along batch
            pl.BlockSpec((I, H), lambda i: (0, 0)),     # w1: VMEM-resident
            pl.BlockSpec((1, H), lambda i: (0, 0)),     # b1
            pl.BlockSpec((H, H), lambda i: (0, 0)),     # w2
            pl.BlockSpec((1, H), lambda i: (0, 0)),     # b2
            pl.BlockSpec((H, NP), lambda i: (0, 0)),    # fused, lane-padded head weights
            pl.BlockSpec((1, NP), lambda i: (0, 0)),    # fused head bias
            pl.BlockSpec((1, NP), lambda i: (0, 0)),    # per-column lower clamp bound
            pl.BlockSpec((1, NP), lambda i: (0, 0)),    # per-column upper clamp bound
        ],
        out_specs=pl.BlockSpec((TB, NP), lambda i: (i, 0)),
        compiler_params=pltpu.CompilerParams(
            dimension_semantics=("parallel",),
        ),
        cost_estimate=pl.CostEstimate(
            flops=flops, bytes_accessed=bytes_accessed, transcendentals=0),
    )(
        state,                       # f32; cast to bf16 inside the kernel
        packed["w1"], packed["b1"],
        packed["w2"], packed["b2"],
        packed["wh"], packed["bh"],
        lo, hi,
    )

    mean = out[:, :A]
    log_std = out[:, A:2 * A]
    return mean, log_std


# ---------------------------------------------------------------------------
# Init + references
# ---------------------------------------------------------------------------
def init_params(key, num_inputs, num_actions, hidden_dim):
    """Deterministic init mimicking PyTorch's default nn.Linear init:
    U(-1/sqrt(fan_in), 1/sqrt(fan_in)) for both weight and bias.
    Weights are stored transposed as [in, out] for the kernel."""
    def linear(k, fan_in, fan_out):
        kw, kb = jax.random.split(k)
        bound = 1.0 / math.sqrt(fan_in)
        w = jax.random.uniform(kw, (fan_in, fan_out), jnp.float32, -bound, bound)
        b = jax.random.uniform(kb, (1, fan_out), jnp.float32, -bound, bound)
        return w, b

    k1, k2, k3, k4 = jax.random.split(key, 4)
    w1, b1 = linear(k1, num_inputs, hidden_dim)
    w2, b2 = linear(k2, hidden_dim, hidden_dim)
    wm, bm = linear(k3, hidden_dim, num_actions)
    ws, bs = linear(k4, hidden_dim, num_actions)
    return dict(w1=w1, b1=b1, w2=w2, b2=b2, wm=wm, bm=bm, ws=ws, bs=bs)


def reference_forward_f32(state, params, *, clip_stddev=1000.0):
    """Pure-JAX f32 reference (mirrors the PyTorch forward, relu activation)."""
    x = jnp.maximum(state @ params["w1"] + params["b1"], 0.0)
    x = jnp.maximum(x @ params["w2"] + params["b2"], 0.0)
    mean = x @ params["wm"] + params["bm"]
    log_std = x @ params["ws"] + params["bs"]
    if clip_stddev > 0:
        t = math.log(clip_stddev)
        log_std = jnp.clip(log_std, -t, t)
    return mean, log_std


def reference_forward_bf16(state, params, *, clip_stddev=1000.0):
    """Precision-matched reference: bf16 matmul operands, f32 accumulation,
    exactly as the kernel computes."""
    bf = jnp.bfloat16
    x = state.astype(bf)
    h1 = jnp.maximum(
        jnp.dot(x, params["w1"].astype(bf), preferred_element_type=jnp.float32)
        + params["b1"], 0.0)
    h2 = jnp.maximum(
        jnp.dot(h1.astype(bf), params["w2"].astype(bf),
                preferred_element_type=jnp.float32) + params["b2"], 0.0)
    mean = jnp.dot(h2.astype(bf), params["wm"].astype(bf),
                   preferred_element_type=jnp.float32) + params["bm"]
    log_std = jnp.dot(h2.astype(bf), params["ws"].astype(bf),
                      preferred_element_type=jnp.float32) + params["bs"]
    if clip_stddev > 0:
        t = math.log(clip_stddev)
        log_std = jnp.clip(log_std, -t, t)
    return mean, log_std


# TODO(synk): sample/rsample/log_prob (torch.distributions Normal/Independent sampling +
# tanh-squash log-prob correction) are not implemented here; only forward() is kernelized.


if __name__ == "__main__":
    # Small, forward-consistent shapes: batch of state feature vectors.
    batch = 32
    num_inputs = 16
    num_actions = 4
    hidden_dim = 32
    clip_stddev = 1000.0

    key = jax.random.PRNGKey(0)
    k_state, k_params = jax.random.split(key)

    state = jax.random.normal(k_state, (batch, num_inputs), jnp.float32)
    params = init_params(k_params, num_inputs, num_actions, hidden_dim)
    packed = pack_params(params, num_actions=num_actions)   # fuse+pad heads, bf16 cast once

    ref_mean_bf, ref_log_std_bf = reference_forward_bf16(
        state, params, clip_stddev=clip_stddev)
    ref_mean, ref_log_std = reference_forward_f32(
        state, params, clip_stddev=clip_stddev)

    # Run 1: auto tile selection (grid=(1,) on v5e/v6e, (2,) on v7x for dual-TC).
    # Run 2: explicit block_batch=16 -> grid=(2,) to exercise the batch-blocked pipeline.
    for bb in (None, 16):
        mean, log_std = squashed_gaussian_forward(
            state, packed, clip_stddev=clip_stddev, block_batch=bb)
        jax.block_until_ready((mean, log_std))

        assert mean.shape == (batch, num_actions)
        assert log_std.shape == (batch, num_actions)

        # Tight check vs the precision-matched (bf16-in / f32-accumulate) reference.
        assert jnp.allclose(mean, ref_mean_bf, atol=2e-3, rtol=2e-3)
        assert jnp.allclose(log_std, ref_log_std_bf, atol=2e-3, rtol=2e-3)

        # Loose check vs the full-f32 reference (bf16 weights/activations -> ~1e-2 error).
        assert jnp.allclose(mean, ref_mean, atol=5e-2, rtol=5e-2)
        assert jnp.allclose(log_std, ref_log_std, atol=5e-2, rtol=5e-2)

    print("KERNEL_OK")
</pallas_src>

<mosaic_0001>
module attributes {stable_mosaic.version = 11 : i64} {
  func.func @_squashed_gaussian_kernel(%arg0: i32, %arg1: memref<32x16xf32, #tpu.memory_space<vmem>>, %arg2: memref<16x32xbf16, #tpu.memory_space<vmem>>, %arg3: memref<1x32xf32, #tpu.memory_space<vmem>>, %arg4: memref<32x32xbf16, #tpu.memory_space<vmem>>, %arg5: memref<1x32xf32, #tpu.memory_space<vmem>>, %arg6: memref<32x128xbf16, #tpu.memory_space<vmem>>, %arg7: memref<1x128xf32, #tpu.memory_space<vmem>>, %arg8: memref<1x128xf32, #tpu.memory_space<vmem>>, %arg9: memref<1x128xf32, #tpu.memory_space<vmem>>, %arg10: memref<32x128xf32, #tpu.memory_space<vmem>>) attributes {dimension_semantics = [#tpu.dimension_semantics<parallel>], iteration_bounds = array<i64: 1>, scalar_prefetch = 0 : i64, scratch_operands = 0 : i64, tpu.core_type = #tpu.core_type<tc>, window_params = [{transform_indices = @transform_0, window_bounds = array<i64: 32, 16>}, {pipeline_mode = #tpu.pipeline_mode<synchronous>, transform_indices = @transform_1, window_bounds = array<i64: 16, 32>}, {pipeline_mode = #tpu.pipeline_mode<synchronous>, transform_indices = @transform_2, window_bounds = array<i64: 1, 32>}, {pipeline_mode = #tpu.pipeline_mode<synchronous>, transform_indices = @transform_3, window_bounds = array<i64: 32, 32>}, {pipeline_mode = #tpu.pipeline_mode<synchronous>, transform_indices = @transform_4, window_bounds = array<i64: 1, 32>}, {pipeline_mode = #tpu.pipeline_mode<synchronous>, transform_indices = @transform_5, window_bounds = array<i64: 32, 128>}, {pipeline_mode = #tpu.pipeline_mode<synchronous>, transform_indices = @transform_6, window_bounds = array<i64: 1, 128>}, {pipeline_mode = #tpu.pipeline_mode<synchronous>, transform_indices = @transform_7, window_bounds = array<i64: 1, 128>}, {pipeline_mode = #tpu.pipeline_mode<synchronous>, transform_indices = @transform_8, window_bounds = array<i64: 1, 128>}, {transform_indices = @transform_9, window_bounds = array<i64: 32, 128>}]} {
    %c0 = arith.constant 0 : index
    %c0_0 = arith.constant 0 : index
    %0 = vector.load %arg1[%c0, %c0_0] : memref<32x16xf32, #tpu.memory_space<vmem>>, vector<32x16xf32>
    %1 = arith.truncf %0 : vector<32x16xf32> to vector<32x16xbf16>
    %c0_1 = arith.constant 0 : index
    %c0_2 = arith.constant 0 : index
    %2 = vector.load %arg2[%c0_1, %c0_2] : memref<16x32xbf16, #tpu.memory_space<vmem>>, vector<16x32xbf16>
    %cst = arith.constant dense<0.000000e+00> : vector<32x32xf32>
    %3 = tpu.matmul %1, %2, %cst {dimension_numbers = #tpu.dot_dimension_numbers<[1], [0], [0], [1], [0, 0, 1, 1], [], []>} : vector<32x16xbf16>, vector<16x32xbf16>, vector<32x32xf32> -> vector<32x32xf32>
    %c0_3 = arith.constant 0 : index
    %c0_4 = arith.constant 0 : index
    %4 = vector.load %arg3[%c0_3, %c0_4] : memref<1x32xf32, #tpu.memory_space<vmem>>, vector<1x32xf32>
    %5 = vector.broadcast %4 : vector<1x32xf32> to vector<32x32xf32>
    %6 = arith.addf %3, %5 : vector<32x32xf32>
    %cst_5 = arith.constant 0.000000e+00 : f32
    %7 = vector.broadcast %cst_5 : f32 to vector<32x32xf32>
    %8 = arith.maximumf %6, %7 : vector<32x32xf32>
    %9 = arith.truncf %8 : vector<32x32xf32> to vector<32x32xbf16>
    %c0_6 = arith.constant 0 : index
    %c0_7 = arith.constant 0 : index
    %10 = vector.load %arg4[%c0_6, %c0_7] : memref<32x32xbf16, #tpu.memory_space<vmem>>, vector<32x32xbf16>
    %cst_8 = arith.constant dense<0.000000e+00> : vector<32x32xf32>
    %11 = tpu.matmul %9, %10, %cst_8 {dimension_numbers = #tpu.dot_dimension_numbers<[1], [0], [0], [1], [0, 0, 1, 1], [], []>} : vector<32x32xbf16>, vector<32x32xbf16>, vector<32x32xf32> -> vector<32x32xf32>
    %c0_9 = arith.constant 0 : index
    %c0_10 = arith.constant 0 : index
    %12 = vector.load %arg5[%c0_9, %c0_10] : memref<1x32xf32, #tpu.memory_space<vmem>>, vector<1x32xf32>
    %13 = vector.broadcast %12 : vector<1x32xf32> to vector<32x32xf32>
    %14 = arith.addf %11, %13 : vector<32x32xf32>
    %cst_11 = arith.constant 0.000000e+00 : f32
    %15 = vector.broadcast %cst_11 : f32 to vector<32x32xf32>
    %16 = arith.maximumf %14, %15 : vector<32x32xf32>
    %17 = arith.truncf %16 : vector<32x32xf32> to vector<32x32xbf16>
    %c0_12 = arith.constant 0 : index
    %c0_13 = arith.constant 0 : index
    %18 = vector.load %arg6[%c0_12, %c0_13] : memref<32x128xbf16, #tpu.memory_space<vmem>>, vector<32x128xbf16>
    %cst_14 = arith.constant dense<0.000000e+00> : vector<32x128xf32>
    %19 = tpu.matmul %17, %18, %cst_14 {dimension_numbers = #tpu.dot_dimension_numbers<[1], [0], [0], [1], [0, 0, 1, 1], [], []>} : vector<32x32xbf16>, vector<32x128xbf16>, vector<32x128xf32> -> vector<32x128xf32>
    %c0_15 = arith.constant 0 : index
    %c0_16 = arith.constant 0 : index
    %20 = vector.load %arg7[%c0_15, %c0_16] : memref<1x128xf32, #tpu.memory_space<vmem>>, vector<1x128xf32>
    %21 = vector.broadcast %20 : vector<1x128xf32> to vector<32x128xf32>
    %22 = arith.addf %19, %21 : vector<32x128xf32>
    %c0_17 = arith.constant 0 : index
    %c0_18 = arith.constant 0 : index
    %23 = vector.load %arg8[%c0_17, %c0_18] : memref<1x128xf32, #tpu.memory_space<vmem>>, vector<1x128xf32>
    %24 = vector.broadcast %23 : vector<1x128xf32> to vector<32x128xf32>
    %25 = arith.maximumf %22, %24 : vector<32x128xf32>
    %c0_19 = arith.constant 0 : index
    %c0_20 = arith.constant 0 : index
    %26 = vector.load %arg9[%c0_19, %c0_20] : memref<1x128xf32, #tpu.memory_space<vmem>>, vector<1x128xf32>
    %27 = vector.broadcast %26 : vector<1x128xf32> to vector<32x128xf32>
    %28 = arith.minimumf %25, %27 : vector<32x128xf32>
    %c0_21 = arith.constant 0 : index
    %c0_22 = arith.constant 0 : index
    %29 = vector.load %arg10[%c0_21, %c0_22] : memref<32x128xf32, #tpu.memory_space<vmem>>, vector<32x128xf32>
    tpu.vector_store %arg10[%c0_21, %c0_22], %28 {strides = array<i32>} : memref<32x128xf32, #tpu.memory_space<vmem>>, vector<32x128xf32>,
    return
  }
  func.func @transform_0(%arg0: i32) -> (i32, i32) {
    %c0_i32 = arith.constant 0 : i32
    %c0_i32_0 = arith.constant 0 : i32
    return %arg0, %c0_i32 : i32, i32
  }
  func.func @transform_1(%arg0: i32) -> (i32, i32) {
    %c0_i32 = arith.constant 0 : i32
    %c0_i32_0 = arith.constant 0 : i32
    %c0_i32_1 = arith.constant 0 : i32
    return %c0_i32, %c0_i32_0 : i32, i32
  }
  func.func @transform_2(%arg0: i32) -> (i32, i32) {
    %c0_i32 = arith.constant 0 : i32
    %c0_i32_0 = arith.constant 0 : i32
    %c0_i32_1 = arith.constant 0 : i32
    return %c0_i32, %c0_i32_0 : i32, i32
  }
  func.func @transform_3(%arg0: i32) -> (i32, i32) {
    %c0_i32 = arith.constant 0 : i32
    %c0_i32_0 = arith.constant 0 : i32
    %c0_i32_1 = arith.constant 0 : i32
    return %c0_i32, %c0_i32_0 : i32, i32
  }
  func.func @transform_4(%arg0: i32) -> (i32, i32) {
    %c0_i32 = arith.constant 0 : i32
    %c0_i32_0 = arith.constant 0 : i32
    %c0_i32_1 = arith.constant 0 : i32
    return %c0_i32, %c0_i32_0 : i32, i32
  }
  func.func @transform_5(%arg0: i32) -> (i32, i32) {
    %c0_i32 = arith.constant 0 : i32
    %c0_i32_0 = arith.constant 0 : i32
    %c0_i32_1 = arith.constant 0 : i32
    return %c0_i32, %c0_i32_0 : i32, i32
  }
  func.func @transform_6(%arg0: i32) -> (i32, i32) {
    %c0_i32 = arith.constant 0 : i32
    %c0_i32_0 = arith.constant 0 : i32
    %c0_i32_1 = arith.constant 0 : i32
    return %c0_i32, %c0_i32_0 : i32, i32
  }
  func.func @transform_7(%arg0: i32) -> (i32, i32) {
    %c0_i32 = arith.constant 0 : i32
    %c0_i32_0 = arith.constant 0 : i32
    %c0_i32_1 = arith.constant 0 : i32
    return %c0_i32, %c0_i32_0 : i32, i32
  }
  func.func @transform_8(%arg0: i32) -> (i32, i32) {
    %c0_i32 = arith.constant 0 : i32
    %c0_i32_0 = arith.constant 0 : i32
    %c0_i32_1 = arith.constant 0 : i32
    return %c0_i32, %c0_i32_0 : i32, i32
  }
  func.func @transform_9(%arg0: i32) -> (i32, i32) {
    %c0_i32 = arith.constant 0 : i32
    %c0_i32_0 = arith.constant 0 : i32
    return %arg0, %c0_i32 : i32, i32
  }
}

</mosaic_0001>

<bundles_post_ra>
// kernel: tpu_custom_call.1
= control target key start
LH: loop header
LB: loop body
LE: loop exit
PB: predicated region body
PF: predicated region fallthrough
CT: control target
= control target key end

     0   :  { %vm55_vm0 = vcmask 130048   ;;  %s514_s0 = inlined_call_operand.vmem [shape: f32[32,16], index: 0, kind: input, shape index: {}]   ;;  %s515_s1 = inlined_call_operand.vmem [shape: bf16[16,32], index: 1, kind: input, shape index: {}]   ;;  %s516_s2 = inlined_call_operand.vmem [shape: f32[1,32], index: 2, kind: input, shape index: {}]   ;;  %s517_s3 = inlined_call_operand.vmem [shape: bf16[32,32], index: 3, kind: input, shape index: {}]   ;;  %s518_s4 = inlined_call_operand.vmem [shape: f32[1,32], index: 4, kind: input, shape index: {}]   ;;  %s519_s5 = inlined_call_operand.vmem [shape: bf16[32,128], index: 5, kind: input, shape index: {}]   ;;  %s520_s6 = inlined_call_operand.vmem [shape: f32[1,128], index: 6, kind: input, shape index: {}]   ;;  %s521_s7 = inlined_call_operand.vmem [shape: f32[1,128], index: 7, kind: input, shape index: {}]   ;;  %s522_s8 = inlined_call_operand.vmem [shape: f32[1,128], index: 8, kind: input, shape index: {}]   ;;  %s523_s9 = inlined_call_operand.hbm [shape: f32[32,128], index: 9, kind: output, shape index: {}]  }
   0x1   :  { %v374_v0 = vld [vmem:[%s515_s1] sm:$0xff]   ;;  %v35_v2 = vld [vmem:[%s514_s0 + $0x8] sm:$0xff]  ;;  %v36_v3 = vld [vmem:[%s514_s0 + $0x10] sm:$0xff] }
   0x2   :  { %v34_v1 = vld [vmem:[%s514_s0] sm:$0xff]  ;;  %349 = vmatprep.subr.bf16.mxu0 %v374_v0  ;;  %v37_v5 = vld [vmem:[%s514_s0 + $0x18] sm:$0xff] }
   0x3   :  { %v38_v4 = vpack.c.bf16 %v35_v2, %v34_v1  ;;  %350 = vmatpush3.bf16.msra.mxu0 %v374_v0  ;;  %v39_v6 = vpack.c.bf16 %v37_v5, %v36_v3 }
   0x5   :  { %351 = vmatprep.mubr.msk.bf16.mxu0 %vm55_vm0, %v38_v4 }
   0x6   :  { %14 = vsyncpa [#allocation3], 0  ;;  %352 = vmatmul.mubr.msk.bf16.vlgmr.msra.gmra.mrb[0].mxu0 %vm55_vm0, %v39_v6  ;;  %v375_v7 = vld [vmem:[%s517_s3] sm:$0xff]   ;;  %v376_v8 = vld [vmem:[%s517_s3 + $0x8] sm:$0xff]   ;;  %vm140_vm1 = vcmask 261120   ;;  %s403_s10 = smov [#allocation2]  }
   0x7   :  { %355 = vmatprep.subr.bf16.mxu1 %v375_v7  ;;  %v322_v9 = vld [vmem:[%s516_s2] ss:$0 sm:$0xff]  ;;  %v378_v25 = vld [vmem:[%s519_s5 + $0x8] sm:$0xff]  }
   0x8   :  { %356 = vmatpush3.bf16.msra.mxu1 %v375_v7  ;;  %v377_v24 = vld [vmem:[%s519_s5] sm:$0xff]  }
   0x9   :  { %357 = vmatprep.subr.bf16.mxu1 %v376_v8  ;;  %363 = vmatprep.subr.bf16.mxu0 %v377_v24  ;;  %v326_v26 = vld [vmem:[%s518_s4] ss:$0 sm:$0xff] }
   0xa   :  { %364 = vmatpush3.bf16.msra.mxu0 %v377_v24  ;;  %v331_v41 = vld [vmem:[%s520_s6] ss:$0 sm:$0xff]  ;;  %s311_s6 = sshll.u32 %s403_s10, 4  ;;  %s312_s6 = int_to_ptr.vmem [resolvable:$true] %s311_s6 }
   0xb   :  { %365 = vmatprep.subr.bf16.mxu0 %v378_v25  ;;  %v336_v43 = vld [vmem:[%s521_s7] ss:$0 sm:$0xff]  ;;  %s379_s7 = scalar_lea.vmem %s312_s6, 512  ;;  %p384_p1 = scmp.lt.s32.totalorder %s312_s6, %s312_s6 }
   0xc   :  { %358 = vmatpush3.bf16.msra.mxu1 %v376_v8  ;;  %v337_v46 = vld [vmem:[%s522_s8] ss:$0 sm:$0xff]  ;;  %p380_p0 = scmp.ne.s32.totalorder %s312_s6, %s379_s7  ;;  %p385_p2 = scmp.lt.s32.totalorder %s379_s7, %s379_s7 }
   0xe   :  { %366 = vmatpush3.bf16.msra.mxu0 %v378_v25  ;;  %p386_p3 = por %p385_p2, %p384_p1 }
  0x10   :  { %p387_p4 = pnand %p386_p3, %p380_p0 }
  0xd9   :  { %v353_v10 = vpop.f32.mrb[0].mxu0 }
  0xda   :  { %v105_v11 = vadd.f32 %v353_v10, %v322_v9  ;;  %v96_v12 = vpop.f32.mrb[1].mxu0 }
  0xdb   :  { %v97_v13 = vadd.f32 %v322_v9, %v96_v12  ;;  %v354_v14 = vpop.f32.mrb[2].mxu0 }
  0xdc   :  { %v108_v15 = vadd.f32 %v354_v14, %v322_v9  ;;  %v99_v16 = vpop.f32.mrb[3].mxu0  ;;  %v113_v18 = vmax.f32 %v105_v11, 0.0 }
  0xdd   :  { %v100_v17 = vadd.f32 %v322_v9, %v99_v16  ;;  %v111_v20 = vmax.f32 %v97_v13, 0.0 }
  0xde   :  { %v114_v19 = vmax.f32 %v108_v15, 0.0 }
  0xdf   :  { %v112_v21 = vmax.f32 %v100_v17, 0.0 }
  0xe0   :  { %v116_v22 = vpack.c.bf16 %v114_v19, %v113_v18 }
  0xe1   :  { %v115_v23 = vpack.c.bf16 %v112_v21, %v111_v20 }
  0xe3   :  { %359 = vmatprep.mubr.msk.bf16.mxu1 %vm140_vm1, %v115_v23 }
  0xe4   :  { %360 = vmatmul.mubr.msk.bf16.vlgmr.msra.gmra.mrb[0].mxu1 %vm140_vm1, %v116_v22 }
 0x1b7   :  { %v361_v27 = vpop.f32.mrb[0].mxu1 }
 0x1b8   :  { %v190_v28 = vadd.f32 %v361_v27, %v326_v26  ;;  %v181_v29 = vpop.f32.mrb[1].mxu1 }
 0x1b9   :  { %v182_v30 = vadd.f32 %v326_v26, %v181_v29  ;;  %v362_v31 = vpop.f32.mrb[2].mxu1 }
 0x1ba   :  { %v193_v32 = vadd.f32 %v362_v31, %v326_v26  ;;  %v184_v33 = vpop.f32.mrb[3].mxu1  ;;  %v198_v35 = vmax.f32 %v190_v28, 0.0 }
 0x1bb   :  { %v185_v34 = vadd.f32 %v326_v26, %v184_v33  ;;  %v196_v37 = vmax.f32 %v182_v30, 0.0 }
 0x1bc   :  { %v199_v36 = vmax.f32 %v193_v32, 0.0 }
 0x1bd   :  { %v197_v38 = vmax.f32 %v185_v34, 0.0 }
 0x1be   :  { %v201_v39 = vpack.c.bf16 %v199_v36, %v198_v35 }
 0x1bf   :  { %v200_v40 = vpack.c.bf16 %v197_v38, %v196_v37 }
 0x1c1   :  { %367 = vmatprep.mubr.msk.bf16.mxu0 %vm140_vm1, %v200_v40 }
 0x1c2   :  { %368 = vmatmul.mubr.msk.bf16.vlgmr.msra.gmra.mrb[4].mxu0 %vm140_vm1, %v201_v39 }
 0x295   :  { %v369_v42 = vpop.f32.mrb[4].mxu0 }
 0x296   :  { %v274_v44 = vadd.f32 %v369_v42, %v331_v41  ;;  %v265_v45 = vpop.f32.mrb[5].mxu0 }
 0x297   :  { %v266_v47 = vadd.f32 %v331_v41, %v265_v45  ;;  %v370_v48 = vpop.f32.mrb[6].mxu0 }
 0x298   :  { %v289_v49 = vmax.f32 %v274_v44, %v336_v43  ;;  %v277_v50 = vadd.f32 %v370_v48, %v331_v41  ;;  %v268_v51 = vpop.f32.mrb[7].mxu0 }
 0x299   :  { %v287_v52 = vmax.f32 %v266_v47, %v336_v43  ;;  %v269_v53 = vadd.f32 %v331_v41, %v268_v51 }
 0x29a   :  { %v300_v54 = vmin.f32 %v289_v49, %v337_v46  ;;  %v290_v55 = vmax.f32 %v277_v50, %v336_v43 }
 0x29b   :  { %v298_v56 = vmin.f32 %v287_v52, %v337_v46  ;;  %v288_v57 = vmax.f32 %v269_v53, %v336_v43 }
 0x29c   :  { %304 = vst [vmem:[#allocation2 + $0x10] sm:$0xff] %v300_v54  ;;  %v301_v58 = vmin.f32 %v290_v55, %v337_v46 }
 0x29d   :  { %302 = vst [vmem:[#allocation2] sm:$0xff] %v298_v56  ;;  %v299_v59 = vmin.f32 %v288_v57, %v337_v46 }
 0x29e   :  { %305 = vst [vmem:[#allocation2 + $0x18] sm:$0xff] %v301_v58 }
 0x29f   :  { %303 = vst [vmem:[#allocation2 + $0x8] sm:$0xff] %v299_v59 }
 0x2a0   :  { %390 = shalt.err (!%p387_p4)
}
 0x2a1   :  { %s391_s12 = scalar_lea.hbm %s523_s9, 512 }
 0x2a2   :  { %p392_p5 = scmp.ne.s32.totalorder %s523_s9, %s391_s12  ;;  %p395_p6 = scmp.lt.u32.totalorder %s391_s12, %s523_s9 }
 0x2a4   :  { %p397_p7 = pnand %p395_p6, %p392_p5 }
 0x2a6   :  { %400 = shalt.err (!%p397_p7)
}
 0x2a7   :  { %s404_s17 = smov 128   ;;  %s405_s18 = smov 8  }
 0x2a8   :  { %317 = dma.vmem_to_hbm [thread:$0]  %s312_s6, 512, %s523_s9, [#allocation3], %s404_s17, %s404_s17, %s405_s18  }
 0x2a9   :  { %401 = dma.done.wait [#allocation3], 512  }
 0x2aa   :  { %402 = vsyncadd [#allocation3], 4294966784 }
 0x2ab   :  { %321 = vsyncpa [#allocation3], 1 }

</bundles_post_ra>
